<compile_context>
chip_gen: v7x
topology: tpu7x:2x2x1
jax: 0.10.0
libtpu: 0.0.40
codegen_flags: <defaults>
</compile_context>

<pallas_src>
import jax
import jax.numpy as jnp
from jax.experimental import pallas as pl
from jax.experimental.pallas import tpu as pltpu

_EPS = 1e-8
_LANES = 128


def _round_up(n, m):
    return ((n + m - 1) // m) * m


def _pick_tiles(b, d, itemsize):
    """Choose (TB, TD): TB % 8 == 0, TD % 128 == 0 (cdiv grid; no array padding)."""
    tb = min(256, _round_up(b, 8))
    # v7x shards only the "parallel" (B) grid axis across its 2 TensorCores:
    # guarantee >= 2 B blocks whenever the batch is big enough.
    if pl.cdiv(b, tb) < 2 and tb > 8:
        tb = _round_up(tb // 2, 8)
    # ~2 MiB per input block (dtype-aware), clamped to [512, 4096] lanes.
    # 2 inputs x 2 pipeline buffers x ~2 MiB ~= 8 MiB VMEM: safe on v5e/v6e
    # (128 MiB physical) and v7x (64 MiB physical / 32 MiB scoped).
    target = (2 * 1024 * 1024) // (tb * itemsize)
    target = max(512, min(4096, target))
    target = (target // _LANES) * _LANES
    td = min(_round_up(d, _LANES), target)
    return tb, td


def _make_cosine_kernel(tb, td, d):
    """Grid = (B tiles, D tiles); D is the trailing reduction axis."""
    n_chunks = td // _LANES
    rem = d % td  # static: # of valid columns in the last D tile (0 => full tile)

    def lane_fold(v):
        # (tb, td) -> (tb, 128): plain VPU adds of the td/128 vreg columns.
        # 128-aligned static lane slices => no relayout, no XLU in steady state.
        acc = v[:, 0:_LANES]
        for c in range(1, n_chunks):
            acc = acc + v[:, c * _LANES:(c + 1) * _LANES]
        return acc

    def kernel(x_ref, y_ref, o_ref, dot_acc, xx_acc, yy_acc):
        k = pl.program_id(1)
        n_k = pl.num_programs(1)

        @pl.when(k == 0)
        def _():
            dot_acc[...] = jnp.zeros_like(dot_acc)
            xx_acc[...] = jnp.zeros_like(xx_acc)
            yy_acc[...] = jnp.zeros_like(yy_acc)

        def accumulate(x, y):
            dot_acc[...] += lane_fold(x * y)
            xx_acc[...] += lane_fold(x * x)
            yy_acc[...] += lane_fold(y * y)

        if rem == 0:
            # D is tile-aligned: every tile is full, no masking anywhere.
            accumulate(x_ref[...].astype(jnp.float32),
                       y_ref[...].astype(jnp.float32))
        else:
            @pl.when(k < n_k - 1)
            def _():
                accumulate(x_ref[...].astype(jnp.float32),
                           y_ref[...].astype(jnp.float32))

            @pl.when(k == n_k - 1)
            def _():
                # Last D tile: columns >= rem are out of bounds (unspecified
                # contents) -- zero them before they touch the partial sums.
                col = jax.lax.broadcasted_iota(jnp.int32, (tb, td), 1)
                valid = col < rem
                accumulate(jnp.where(valid, x_ref[...].astype(jnp.float32), 0.0),
                           jnp.where(valid, y_ref[...].astype(jnp.float32), 0.0))

        # Epilogue: once per B tile -- one cross-lane (XLU) reduce per quantity,
        # then sqrt / clamp / divide, stored lane-dense.
        @pl.when(k == n_k - 1)
        def _():
            dot = jnp.sum(dot_acc[...], axis=-1, keepdims=True)
            xx = jnp.sum(xx_acc[...], axis=-1, keepdims=True)
            yy = jnp.sum(yy_acc[...], axis=-1, keepdims=True)
            denom = jnp.maximum(jnp.sqrt(xx) * jnp.sqrt(yy), _EPS)
            cos = dot / denom                                # (tb, 1)
            o_ref[...] = jnp.broadcast_to(cos, o_ref.shape)  # lane-dense store

    return kernel


def _cosine_loss_reference(x2, y2):
    xf = x2.astype(jnp.float32)
    yf = y2.astype(jnp.float32)
    dot = jnp.sum(xf * yf, axis=-1)
    denom = jnp.maximum(
        jnp.sqrt(jnp.sum(xf * xf, axis=-1)) * jnp.sqrt(jnp.sum(yf * yf, axis=-1)),
        _EPS)
    return 1.0 - jnp.mean(dot / denom)


def cosine_loss(x, y, *, force_pallas=False):
    """x, y: arrays of shape (B, ...) -- flattened per-example like torch .view(b, -1)."""
    b = x.shape[0]
    x2 = jnp.reshape(x, (b, -1))
    y2 = jnp.reshape(y, (b, -1))
    d = x2.shape[1]
    itemsize = jnp.dtype(x2.dtype).itemsize

    # Tiny-shape fast path: a fused XLA reduce beats the fixed pallas_call
    # launch overhead and there is no HBM-traffic argument at this size.
    if not force_pallas and 2 * b * d * itemsize < (2 << 20):
        return _cosine_loss_reference(x2, y2)

    tb, td = _pick_tiles(b, d, itemsize)
    grid = (pl.cdiv(b, tb), pl.cdiv(d, td))

    cos_rows = pl.pallas_call(
        _make_cosine_kernel(tb, td, d),
        out_shape=jax.ShapeDtypeStruct((b, _LANES), jnp.float32),
        grid_spec=pltpu.PrefetchScalarGridSpec(
            num_scalar_prefetch=0,
            grid=grid,
            in_specs=[
                pl.BlockSpec((tb, td), lambda i, k: (i, k)),
                pl.BlockSpec((tb, td), lambda i, k: (i, k)),
            ],
            out_specs=pl.BlockSpec((tb, _LANES), lambda i, k: (i, 0)),
            scratch_shapes=[
                pltpu.VMEM((tb, _LANES), jnp.float32),  # lane-partial sum(x*y)
                pltpu.VMEM((tb, _LANES), jnp.float32),  # lane-partial sum(x*x)
                pltpu.VMEM((tb, _LANES), jnp.float32),  # lane-partial sum(y*y)
            ],
        ),
        compiler_params=pltpu.CompilerParams(
            # B tiles independent (shards across v7x's 2 TCs); D is the reduction.
            dimension_semantics=("parallel", "arbitrary"),
            # ~8.5 MiB actually used; explicit limit needed on v5e (16 MiB
            # scoped default), safe on v7x (64 MiB physical / 32 MiB scoped).
            vmem_limit_bytes=32 * 1024 * 1024,
        ),
    )(x2, y2)

    # Trivial finish in plain JAX: lane 0 of each valid row, mean, 1 - mean.
    return 1.0 - jnp.mean(cos_rows[:b, 0])


if __name__ == "__main__":
    key = jax.random.PRNGKey(0)
    cases = [
        # (shape, dtype) -- small NCHW shapes consistent with the module.
        ((2, 4, 16, 16), jnp.float32),   # D = 1024 (tile-aligned)
        ((4, 3, 20, 20), jnp.float32),   # B and D both non-aligned -> edge masking
        ((2, 3, 17, 19), jnp.bfloat16),  # bf16 input, non-aligned D
    ]
    for shape, dtype in cases:
        key, kx, ky = jax.random.split(key, 3)
        x = jax.random.normal(kx, shape, dtype=jnp.float32).astype(dtype)
        y = jax.random.normal(ky, shape, dtype=jnp.float32).astype(dtype)

        loss = cosine_loss(x, y, force_pallas=True)   # exercise the Pallas path
        jax.block_until_ready(loss)

        b = shape[0]
        ref = _cosine_loss_reference(x.reshape(b, -1), y.reshape(b, -1))
        assert jnp.allclose(loss, ref, atol=1e-5, rtol=1e-5), (shape, dtype, loss, ref)

    # Auto path: tiny shapes take the plain-jnp fast path.
    key, kx, ky = jax.random.split(key, 3)
    x = jax.random.normal(kx, (2, 4, 16, 16), dtype=jnp.float32)
    y = jax.random.normal(ky, (2, 4, 16, 16), dtype=jnp.float32)
    loss = cosine_loss(x, y)
    jax.block_until_ready(loss)
    ref = _cosine_loss_reference(x.reshape(2, -1), y.reshape(2, -1))
    assert jnp.allclose(loss, ref, atol=1e-5, rtol=1e-5), (loss, ref)

    print("KERNEL_OK")
</pallas_src>

<mosaic_0001>
module attributes {stable_mosaic.version = 11 : i64} {
  func.func @kernel(%arg0: i32, %arg1: i32, %arg2: memref<8x1024xf32, #tpu.memory_space<vmem>>, %arg3: memref<8x1024xf32, #tpu.memory_space<vmem>>, %arg4: memref<8x128xf32, #tpu.memory_space<vmem>>, %arg5: memref<8x128xf32, #tpu.memory_space<vmem>>, %arg6: memref<8x128xf32, #tpu.memory_space<vmem>>, %arg7: memref<8x128xf32, #tpu.memory_space<vmem>>) attributes {dimension_semantics = [#tpu.dimension_semantics<parallel>, #tpu.dimension_semantics<arbitrary>], iteration_bounds = array<i64: 1, 1>, scalar_prefetch = 0 : i64, scratch_operands = 3 : i64, tpu.core_type = #tpu.core_type<tc>, window_params = [{transform_indices = @transform_0, window_bounds = array<i64: 8, 1024>}, {transform_indices = @transform_1, window_bounds = array<i64: 8, 1024>}, {transform_indices = @transform_2, window_bounds = array<i64: 8, 128>}]} {
    %c0_i32 = arith.constant 0 : i32
    %0 = arith.cmpi eq, %arg1, %c0_i32 : i32
    %1 = arith.extui %0 : i1 to i32
    %c0_i32_0 = arith.constant 0 : i32
    %2 = arith.cmpi ne, %1, %c0_i32_0 : i32
    scf.if %2 {
      %cst = arith.constant 0.000000e+00 : f32
      %65 = vector.broadcast %cst : f32 to vector<8x128xf32>
      %c0_18 = arith.constant 0 : index
      %c0_19 = arith.constant 0 : index
      %66 = vector.load %arg5[%c0_18, %c0_19] : memref<8x128xf32, #tpu.memory_space<vmem>>, vector<8x128xf32>
      tpu.vector_store %arg5[%c0_18, %c0_19], %65 {strides = array<i32>} : memref<8x128xf32, #tpu.memory_space<vmem>>, vector<8x128xf32>,
      %cst_20 = arith.constant 0.000000e+00 : f32
      %67 = vector.broadcast %cst_20 : f32 to vector<8x128xf32>
      %c0_21 = arith.constant 0 : index
      %c0_22 = arith.constant 0 : index
      %68 = vector.load %arg6[%c0_21, %c0_22] : memref<8x128xf32, #tpu.memory_space<vmem>>, vector<8x128xf32>
      tpu.vector_store %arg6[%c0_21, %c0_22], %67 {strides = array<i32>} : memref<8x128xf32, #tpu.memory_space<vmem>>, vector<8x128xf32>,
      %cst_23 = arith.constant 0.000000e+00 : f32
      %69 = vector.broadcast %cst_23 : f32 to vector<8x128xf32>
      %c0_24 = arith.constant 0 : index
      %c0_25 = arith.constant 0 : index
      %70 = vector.load %arg7[%c0_24, %c0_25] : memref<8x128xf32, #tpu.memory_space<vmem>>, vector<8x128xf32>
      tpu.vector_store %arg7[%c0_24, %c0_25], %69 {strides = array<i32>} : memref<8x128xf32, #tpu.memory_space<vmem>>, vector<8x128xf32>,
    } else {
    }
    %c0 = arith.constant 0 : index
    %c0_1 = arith.constant 0 : index
    %3 = vector.load %arg2[%c0, %c0_1] : memref<8x1024xf32, #tpu.memory_space<vmem>>, vector<8x1024xf32>
    %c0_2 = arith.constant 0 : index
    %c0_3 = arith.constant 0 : index
    %4 = vector.load %arg3[%c0_2, %c0_3] : memref<8x1024xf32, #tpu.memory_space<vmem>>, vector<8x1024xf32>
    %c0_4 = arith.constant 0 : index
    %c0_5 = arith.constant 0 : index
    %5 = vector.load %arg5[%c0_4, %c0_5] : memref<8x128xf32, #tpu.memory_space<vmem>>, vector<8x128xf32>
    %6 = arith.mulf %3, %4 : vector<8x1024xf32>
    %7 = vector.extract_strided_slice %6 {offsets = [0, 0], sizes = [8, 128], strides = [1, 1]} : vector<8x1024xf32> to vector<8x128xf32>
    %8 = vector.extract_strided_slice %6 {offsets = [0, 128], sizes = [8, 128], strides = [1, 1]} : vector<8x1024xf32> to vector<8x128xf32>
    %9 = arith.addf %7, %8 : vector<8x128xf32>
    %10 = vector.extract_strided_slice %6 {offsets = [0, 256], sizes = [8, 128], strides = [1, 1]} : vector<8x1024xf32> to vector<8x128xf32>
    %11 = arith.addf %9, %10 : vector<8x128xf32>
    %12 = vector.extract_strided_slice %6 {offsets = [0, 384], sizes = [8, 128], strides = [1, 1]} : vector<8x1024xf32> to vector<8x128xf32>
    %13 = arith.addf %11, %12 : vector<8x128xf32>
    %14 = vector.extract_strided_slice %6 {offsets = [0, 512], sizes = [8, 128], strides = [1, 1]} : vector<8x1024xf32> to vector<8x128xf32>
    %15 = arith.addf %13, %14 : vector<8x128xf32>
    %16 = vector.extract_strided_slice %6 {offsets = [0, 640], sizes = [8, 128], strides = [1, 1]} : vector<8x1024xf32> to vector<8x128xf32>
    %17 = arith.addf %15, %16 : vector<8x128xf32>
    %18 = vector.extract_strided_slice %6 {offsets = [0, 768], sizes = [8, 128], strides = [1, 1]} : vector<8x1024xf32> to vector<8x128xf32>
    %19 = arith.addf %17, %18 : vector<8x128xf32>
    %20 = vector.extract_strided_slice %6 {offsets = [0, 896], sizes = [8, 128], strides = [1, 1]} : vector<8x1024xf32> to vector<8x128xf32>
    %21 = arith.addf %19, %20 : vector<8x128xf32>
    %22 = arith.addf %5, %21 : vector<8x128xf32>
    %c0_6 = arith.constant 0 : index
    %c0_7 = arith.constant 0 : index
    %23 = vector.load %arg5[%c0_6, %c0_7] : memref<8x128xf32, #tpu.memory_space<vmem>>, vector<8x128xf32>
    tpu.vector_store %arg5[%c0_6, %c0_7], %22 {strides = array<i32>} : memref<8x128xf32, #tpu.memory_space<vmem>>, vector<8x128xf32>,
    %c0_8 = arith.constant 0 : index
    %c0_9 = arith.constant 0 : index
    %24 = vector.load %arg6[%c0_8, %c0_9] : memref<8x128xf32, #tpu.memory_space<vmem>>, vector<8x128xf32>
    %25 = arith.mulf %3, %3 : vector<8x1024xf32>
    %26 = vector.extract_strided_slice %25 {offsets = [0, 0], sizes = [8, 128], strides = [1, 1]} : vector<8x1024xf32> to vector<8x128xf32>
    %27 = vector.extract_strided_slice %25 {offsets = [0, 128], sizes = [8, 128], strides = [1, 1]} : vector<8x1024xf32> to vector<8x128xf32>
    %28 = arith.addf %26, %27 : vector<8x128xf32>
    %29 = vector.extract_strided_slice %25 {offsets = [0, 256], sizes = [8, 128], strides = [1, 1]} : vector<8x1024xf32> to vector<8x128xf32>
    %30 = arith.addf %28, %29 : vector<8x128xf32>
    %31 = vector.extract_strided_slice %25 {offsets = [0, 384], sizes = [8, 128], strides = [1, 1]} : vector<8x1024xf32> to vector<8x128xf32>
    %32 = arith.addf %30, %31 : vector<8x128xf32>
    %33 = vector.extract_strided_slice %25 {offsets = [0, 512], sizes = [8, 128], strides = [1, 1]} : vector<8x1024xf32> to vector<8x128xf32>
    %34 = arith.addf %32, %33 : vector<8x128xf32>
    %35 = vector.extract_strided_slice %25 {offsets = [0, 640], sizes = [8, 128], strides = [1, 1]} : vector<8x1024xf32> to vector<8x128xf32>
    %36 = arith.addf %34, %35 : vector<8x128xf32>
    %37 = vector.extract_strided_slice %25 {offsets = [0, 768], sizes = [8, 128], strides = [1, 1]} : vector<8x1024xf32> to vector<8x128xf32>
    %38 = arith.addf %36, %37 : vector<8x128xf32>
    %39 = vector.extract_strided_slice %25 {offsets = [0, 896], sizes = [8, 128], strides = [1, 1]} : vector<8x1024xf32> to vector<8x128xf32>
    %40 = arith.addf %38, %39 : vector<8x128xf32>
    %41 = arith.addf %24, %40 : vector<8x128xf32>
    %c0_10 = arith.constant 0 : index
    %c0_11 = arith.constant 0 : index
    %42 = vector.load %arg6[%c0_10, %c0_11] : memref<8x128xf32, #tpu.memory_space<vmem>>, vector<8x128xf32>
    tpu.vector_store %arg6[%c0_10, %c0_11], %41 {strides = array<i32>} : memref<8x128xf32, #tpu.memory_space<vmem>>, vector<8x128xf32>,
    %c0_12 = arith.constant 0 : index
    %c0_13 = arith.constant 0 : index
    %43 = vector.load %arg7[%c0_12, %c0_13] : memref<8x128xf32, #tpu.memory_space<vmem>>, vector<8x128xf32>
    %44 = arith.mulf %4, %4 : vector<8x1024xf32>
    %45 = vector.extract_strided_slice %44 {offsets = [0, 0], sizes = [8, 128], strides = [1, 1]} : vector<8x1024xf32> to vector<8x128xf32>
    %46 = vector.extract_strided_slice %44 {offsets = [0, 128], sizes = [8, 128], strides = [1, 1]} : vector<8x1024xf32> to vector<8x128xf32>
    %47 = arith.addf %45, %46 : vector<8x128xf32>
    %48 = vector.extract_strided_slice %44 {offsets = [0, 256], sizes = [8, 128], strides = [1, 1]} : vector<8x1024xf32> to vector<8x128xf32>
    %49 = arith.addf %47, %48 : vector<8x128xf32>
    %50 = vector.extract_strided_slice %44 {offsets = [0, 384], sizes = [8, 128], strides = [1, 1]} : vector<8x1024xf32> to vector<8x128xf32>
    %51 = arith.addf %49, %50 : vector<8x128xf32>
    %52 = vector.extract_strided_slice %44 {offsets = [0, 512], sizes = [8, 128], strides = [1, 1]} : vector<8x1024xf32> to vector<8x128xf32>
    %53 = arith.addf %51, %52 : vector<8x128xf32>
    %54 = vector.extract_strided_slice %44 {offsets = [0, 640], sizes = [8, 128], strides = [1, 1]} : vector<8x1024xf32> to vector<8x128xf32>
    %55 = arith.addf %53, %54 : vector<8x128xf32>
    %56 = vector.extract_strided_slice %44 {offsets = [0, 768], sizes = [8, 128], strides = [1, 1]} : vector<8x1024xf32> to vector<8x128xf32>
    %57 = arith.addf %55, %56 : vector<8x128xf32>
    %58 = vector.extract_strided_slice %44 {offsets = [0, 896], sizes = [8, 128], strides = [1, 1]} : vector<8x1024xf32> to vector<8x128xf32>
    %59 = arith.addf %57, %58 : vector<8x128xf32>
    %60 = arith.addf %43, %59 : vector<8x128xf32>
    %c0_14 = arith.constant 0 : index
    %c0_15 = arith.constant 0 : index
    %61 = vector.load %arg7[%c0_14, %c0_15] : memref<8x128xf32, #tpu.memory_space<vmem>>, vector<8x128xf32>
    tpu.vector_store %arg7[%c0_14, %c0_15], %60 {strides = array<i32>} : memref<8x128xf32, #tpu.memory_space<vmem>>, vector<8x128xf32>,
    %c0_i32_16 = arith.constant 0 : i32
    %62 = arith.cmpi eq, %arg1, %c0_i32_16 : i32
    %63 = arith.extui %62 : i1 to i32
    %c0_i32_17 = arith.constant 0 : i32
    %64 = arith.cmpi ne, %63, %c0_i32_17 : i32
    scf.if %64 {
      %c0_18 = arith.constant 0 : index
      %c0_19 = arith.constant 0 : index
      %65 = vector.load %arg5[%c0_18, %c0_19] : memref<8x128xf32, #tpu.memory_space<vmem>>, vector<8x128xf32>
      %cst = arith.constant dense<0.000000e+00> : vector<8xf32>
      %66 = vector.multi_reduction <add>, %65, %cst [1] : vector<8x128xf32> to vector<8xf32>
      %67 = vector.shape_cast %66 : vector<8xf32> to vector<8x1xf32>
      %c0_20 = arith.constant 0 : index
      %c0_21 = arith.constant 0 : index
      %68 = vector.load %arg6[%c0_20, %c0_21] : memref<8x128xf32, #tpu.memory_space<vmem>>, vector<8x128xf32>
      %cst_22 = arith.constant dense<0.000000e+00> : vector<8xf32>
      %69 = vector.multi_reduction <add>, %68, %cst_22 [1] : vector<8x128xf32> to vector<8xf32>
      %70 = vector.shape_cast %69 : vector<8xf32> to vector<8x1xf32>
      %c0_23 = arith.constant 0 : index
      %c0_24 = arith.constant 0 : index
      %71 = vector.load %arg7[%c0_23, %c0_24] : memref<8x128xf32, #tpu.memory_space<vmem>>, vector<8x128xf32>
      %cst_25 = arith.constant dense<0.000000e+00> : vector<8xf32>
      %72 = vector.multi_reduction <add>, %71, %cst_25 [1] : vector<8x128xf32> to vector<8xf32>
      %73 = vector.shape_cast %72 : vector<8xf32> to vector<8x1xf32>
      %74 = math.sqrt %70 : vector<8x1xf32>
      %75 = math.sqrt %73 : vector<8x1xf32>
      %76 = arith.mulf %74, %75 : vector<8x1xf32>
      %cst_26 = arith.constant 9.99999993E-9 : f32
      %77 = vector.broadcast %cst_26 : f32 to vector<8x1xf32>
      %78 = arith.maximumf %76, %77 : vector<8x1xf32>
      %79 = arith.divf %67, %78 : vector<8x1xf32>
      %80 = vector.shape_cast %79 : vector<8x1xf32> to vector<8x1xf32>
      %81 = vector.broadcast %80 : vector<8x1xf32> to vector<8x128xf32>
      %c0_27 = arith.constant 0 : index
      %c0_28 = arith.constant 0 : index
      %82 = vector.load %arg4[%c0_27, %c0_28] : memref<8x128xf32, #tpu.memory_space<vmem>>, vector<8x128xf32>
      tpu.vector_store %arg4[%c0_27, %c0_28], %81 {strides = array<i32>} : memref<8x128xf32, #tpu.memory_space<vmem>>, vector<8x128xf32>,
    } else {
    }
    return
  }
  func.func @transform_0(%arg0: i32, %arg1: i32) -> (i32, i32) {
    %c0_i32 = arith.constant 0 : i32
    return %arg0, %arg1 : i32, i32
  }
  func.func @transform_1(%arg0: i32, %arg1: i32) -> (i32, i32) {
    %c0_i32 = arith.constant 0 : i32
    return %arg0, %arg1 : i32, i32
  }
  func.func @transform_2(%arg0: i32, %arg1: i32) -> (i32, i32) {
    %c0_i32 = arith.constant 0 : i32
    %c0_i32_0 = arith.constant 0 : i32
    return %arg0, %c0_i32 : i32, i32
  }
}

</mosaic_0001>

<bundles_post_ra>
// kernel: tpu_custom_call.1
= control target key start
LH: loop header
LB: loop body
LE: loop exit
PB: predicated region body
PF: predicated region fallthrough
CT: control target
= control target key end

     0   :  { %7 = vsyncpa [#allocation6], 0  ;;  %s756_s0 = inlined_call_operand.hbm [shape: f32[2,1024], index: 0, kind: input, shape index: {}]   ;;  %s757_s1 = inlined_call_operand.hbm [shape: f32[2,1024], index: 1, kind: input, shape index: {}]   ;;  %s758_s2 = inlined_call_operand.hbm [shape: f32[2,128], index: 2, kind: output, shape index: {}]  }
   0x1   :  { %8 = vsyncpa [#allocation9], 0 }
   0x2   :  { %9 = vsyncpa [#allocation7], 0 }
   0x3   :  { %14 = vsyncadd [#allocation6], 768  ;;  %s549_s9 = smov [#allocation5]   ;;  %s477_s13 = scalar_lea.hbm %s756_s0, 256 }
   0x4   :  { %s15_s10 = sshll.u32 %s549_s9, 4  ;;  %p478_p0 = scmp.ne.s32.totalorder %s756_s0, %s477_s13  ;;  %s16_s10 = int_to_ptr.vmem [resolvable:$true] %s15_s10 }
   0x5   :  { %p481_p1 = scmp.lt.u32.totalorder %s477_s13, %s756_s0 }
   0x7   :  { %p483_p2 = pnand %p481_p1, %p478_p0 }
   0x9   :  { %486 = shalt.err (!%p483_p2)
}
   0xa   :  { %s487_s18 = scalar_lea.vmem %s16_s10, 256  ;;  %s491_s19 = scalar_lea.vmem %s16_s10, 1024 }
   0xb   :  { %p488_p3 = scmp.ne.s32.totalorder %s16_s10, %s487_s18  ;;  %p492_p4 = scmp.lt.s32.totalorder %s16_s10, %s16_s10 }
   0xc   :  { %p493_p5 = scmp.lt.s32.totalorder %s491_s19, %s487_s18 }
   0xe   :  { %p494_p6 = por %p493_p5, %p492_p4 }
  0x10   :  { %p495_p7 = pnand %p494_p6, %p488_p3 }
  0x12   :  { %498 = shalt.err (!%p495_p7)
}
  0x13   :  { %s550_s20 = smov 256   ;;  %s551_s21 = smov 16  }
  0x14   :  { %21 = dma.hbm_to_vmem [thread:$0]  %s756_s0, 256, %s16_s10, [#allocation6], %s550_s20, %s550_s20, %s551_s21  }
  0x15   :  { %26 = vsyncadd [#allocation9], 768  ;;  %s552_s24 = smov [#allocation8]   ;;  %s499_s28 = scalar_lea.hbm %s757_s1, 256 }
  0x16   :  { %s27_s25 = sshll.u32 %s552_s24, 4  ;;  %p500_p8 = scmp.ne.s32.totalorder %s757_s1, %s499_s28  ;;  %s28_s25 = int_to_ptr.vmem [resolvable:$true] %s27_s25 }
  0x17   :  { %p503_p9 = scmp.lt.u32.totalorder %s499_s28, %s757_s1 }
  0x19   :  { %p505_p10 = pnand %p503_p9, %p500_p8 }
  0x1b   :  { %508 = shalt.err (!%p505_p10)
}
  0x1c   :  { %s509_s5 = scalar_lea.vmem %s28_s25, 256  ;;  %s513_s0 = scalar_lea.vmem %s28_s25, 1024 }
  0x1d   :  { %p510_p11 = scmp.ne.s32.totalorder %s28_s25, %s509_s5  ;;  %p514_p12 = scmp.lt.s32.totalorder %s28_s25, %s28_s25 }
  0x1e   :  { %p515_p13 = scmp.lt.s32.totalorder %s513_s0, %s509_s5 }
  0x20   :  { %p516_p0 = por %p515_p13, %p514_p12 }
  0x22   :  { %p517_p1 = pnand %p516_p0, %p510_p11 }
  0x24   :  { %520 = shalt.err (!%p517_p1)
}
  0x25   :  { %33 = dma.hbm_to_vmem [thread:$0]  %s757_s1, 256, %s28_s25, [#allocation9], %s550_s20, %s550_s20, %s551_s21  }
  0x26   :  { %543 = dma.done.wait [#allocation6], 1024  }
  0x27   :  { %544 = vsyncadd [#allocation6], 4294966272 }
  0x28   :  { %545 = dma.done.wait [#allocation9], 1024  }
  0x29   :  { %546 = vsyncadd [#allocation9], 4294966272  ;;  %v165_v0 = vlaneseq  ;;  %v553_v1 = vmov 1983009808   ;;  %v596_v5 = vld [vmem:[#allocation5] sm:$0xff]  ;;  %v598_v6 = vld [vmem:[#allocation5 + $0x8] sm:$0xff] }
  0x2a   :  { %v163_v2 = vunpack.c.l.s4 %v553_v1  ;;  %v600_v7 = vld [vmem:[#allocation5 + $0x10] sm:$0xff]  ;;  %v602_v8 = vld [vmem:[#allocation5 + $0x18] sm:$0xff]  ;;  %v604_v9 = vld [vmem:[#allocation5 + $0x20] sm:$0xff]  ;;  %v181_v12 = vmul.f32 %v596_v5, %v596_v5  ;;  %v620_v16 = vmul.f32 %v598_v6, %v598_v6 }
  0x2b   :  { %v166_v4 = vshrl.u32 %v165_v0, 7  ;;  %v606_v10 = vld [vmem:[#allocation5 + $0x28] sm:$0xff]  ;;  %v183_v13 = vmul.f32 %v600_v7, %v600_v7  ;;  %v614_v14 = vld [vmem:[#allocation5 + $0x30] sm:$0xff]  ;;  %v616_v15 = vld [vmem:[#allocation5 + $0x38] sm:$0xff]  ;;  %v624_v17 = vmul.f32 %v602_v8, %v602_v8  ;;  %v185_v18 = vmul.f32 %v604_v9, %v604_v9 }
  0x2c   :  { %v164_v3 = vunpack.c.0.s8 %v163_v2  ;;  %v630_v19 = vmul.f32 %v606_v10, %v606_v10  ;;  %v187_v20 = vmul.f32 %v614_v14, %v614_v14  ;;  %v636_v21 = vmul.f32 %v616_v15, %v616_v15  ;;  %v648_v56 = vld [vmem:[#allocation8] sm:$0xff]  ;;  %v650_v57 = vld [vmem:[#allocation8 + $0x8] sm:$0xff]  ;;  %v652_v58 = vld [vmem:[#allocation8 + $0x10] sm:$0xff] }
  0x2d   :  { %v193_v22 = vrot.slane %v181_v12, 2  ;;  %v194_v23 = vrot.slane %v183_v13, 2  ;;  %v195_v24 = vrot.slane %v185_v18, 2  ;;  %v205_v25 = vrot.slane %v181_v12, 4  ;;  %v658_v63 = vld [vmem:[#allocation8 + $0x18] sm:$0xff] }
  0x2e   :  { %v608_v11 = vsub.s32 %v164_v3, %v166_v4  ;;  %v206_v26 = vrot.slane %v183_v13, 4  ;;  %v207_v27 = vrot.slane %v185_v18, 4  ;;  %v196_v28 = vrot.slane %v187_v20, 2  ;;  %v662_v4 = vld [vmem:[#allocation8 + $0x20] sm:$0xff] }
  0x2f   :  { %v201_v29 = vadd.f32 %v193_v22, %v181_v12  ;;  %v202_v30 = vadd.f32 %v194_v23, %v183_v13  ;;  %v208_v31 = vrot.slane %v187_v20, 4  ;;  %v203_v32 = vadd.f32 %v195_v24, %v185_v18 }
  0x30   :  { %v217_v33 = vrot.slane %v181_v12, 6  ;;  %v218_v34 = vrot.slane %v183_v13, 6  ;;  %v219_v35 = vrot.slane %v185_v18, 6  ;;  %v204_v36 = vadd.f32 %v196_v28, %v187_v20  ;;  %v664_v12 = vld [vmem:[#allocation8 + $0x28] sm:$0xff]  ;;  %v666_v13 = vld [vmem:[#allocation8 + $0x30] sm:$0xff] }
  0x31   :  { %v213_v37 = vadd.f32 %v205_v25, %v201_v29  ;;  %v214_v38 = vadd.f32 %v206_v26, %v202_v30  ;;  %v220_v39 = vrot.slane %v187_v20, 6  ;;  %v215_v40 = vadd.f32 %v207_v27, %v203_v32 }
  0x32   :  { %v237_v41 = vrot.slane %v620_v16, 2  ;;  %v238_v42 = vrot.slane %v624_v17, 2  ;;  %v239_v43 = vrot.slane %v630_v19, 2  ;;  %v216_v44 = vadd.f32 %v208_v31, %v204_v36 }
  0x33   :  { %v225_v45 = vadd.f32 %v217_v33, %v213_v37  ;;  %v226_v46 = vadd.f32 %v218_v34, %v214_v38  ;;  %v240_v47 = vrot.slane %v636_v21, 2  ;;  %v227_v48 = vadd.f32 %v219_v35, %v215_v40 }
  0x34   :  { %v249_v49 = vrot.slane %v620_v16, 4  ;;  %v250_v50 = vrot.slane %v624_v17, 4  ;;  %v251_v51 = vrot.slane %v630_v19, 4  ;;  %v228_v52 = vadd.f32 %v220_v39, %v216_v44 }
  0x35   :  { %v229_v53 = vadd.f32 %v225_v45, %v620_v16  ;;  %v230_v54 = vadd.f32 %v226_v46, %v624_v17  ;;  %v252_v55 = vrot.slane %v636_v21, 4  ;;  %v231_v59 = vadd.f32 %v227_v48, %v630_v19 }
  0x36   :  { %v261_v60 = vrot.slane %v620_v16, 6  ;;  %v262_v61 = vrot.slane %v624_v17, 6  ;;  %v263_v62 = vrot.slane %v630_v19, 6  ;;  %v232_v0 = vadd.f32 %v228_v52, %v636_v21  ;;  %v668_v16 = vld [vmem:[#allocation8 + $0x38] sm:$0xff] }
  0x37   :  { %v245_v1 = vadd.f32 %v237_v41, %v229_v53  ;;  %v246_v2 = vadd.f32 %v238_v42, %v230_v54  ;;  %v264_v3 = vrot.slane %v636_v21, 6  ;;  %v247_v18 = vadd.f32 %v239_v43, %v231_v59 }
  0x38   :  { %v298_v17 = vmul.f32 %v648_v56, %v648_v56  ;;  %v674_v19 = vmul.f32 %v650_v57, %v650_v57  ;;  %v300_v20 = vmul.f32 %v652_v58, %v652_v58  ;;  %v248_v21 = vadd.f32 %v240_v47, %v232_v0 }
  0x39   :  { %v257_v22 = vadd.f32 %v249_v49, %v245_v1  ;;  %v258_v23 = vadd.f32 %v250_v50, %v246_v2  ;;  %v680_v24 = vmul.f32 %v658_v63, %v658_v63  ;;  %v259_v25 = vadd.f32 %v251_v51, %v247_v18 }
  0x3a   :  { %v302_v26 = vmul.f32 %v662_v4, %v662_v4  ;;  %v686_v27 = vmul.f32 %v664_v12, %v664_v12  ;;  %v304_v28 = vmul.f32 %v666_v13, %v666_v13  ;;  %v260_v29 = vadd.f32 %v252_v55, %v248_v21 }
  0x3b   :  { %v269_v30 = vadd.f32 %v261_v60, %v257_v22  ;;  %v270_v31 = vadd.f32 %v262_v61, %v258_v23  ;;  %v692_v32 = vmul.f32 %v668_v16, %v668_v16  ;;  %v271_v33 = vadd.f32 %v263_v62, %v259_v25 }
  0x3c   :  { %v310_v34 = vrot.slane %v298_v17, 2  ;;  %v311_v35 = vrot.slane %v300_v20, 2  ;;  %v312_v36 = vrot.slane %v302_v26, 2  ;;  %v272_v37 = vadd.f32 %v264_v3, %v260_v29 }
  0x3d   :  { %v277_v38 = vcombine.low %v269_v30, %v270_v31  ;;  %v313_v39 = vrot.slane %v304_v28, 2  ;;  %v322_v40 = vrot.slane %v298_v17, 4  ;;  %v323_v44 = vrot.slane %v300_v20, 4 }
  0x3e   :  { %v318_v41 = vadd.f32 %v310_v34, %v298_v17  ;;  %v319_v42 = vadd.f32 %v311_v35, %v300_v20  ;;  %v320_v43 = vadd.f32 %v312_v36, %v302_v26  ;;  %v278_v45 = vcombine.low %v271_v33, %v272_v37 }
  0x3f   :  { %v285_v46 = vrot.slane %v277_v38, %v608_v11  ;;  %v321_v47 = vadd.f32 %v313_v39, %v304_v28  ;;  %v324_v48 = vrot.slane %v302_v26, 4  ;;  %v325_v49 = vrot.slane %v304_v28, 4 }
  0x40   :  { %v330_v50 = vadd.f32 %v322_v40, %v318_v41  ;;  %v331_v51 = vadd.f32 %v323_v44, %v319_v42  ;;  %v334_v52 = vrot.slane %v298_v17, 6  ;;  %v292_v53 = vrot.slane %v278_v45, %v608_v11 }
  0x41   :  { %v332_v54 = vadd.f32 %v324_v48, %v320_v43  ;;  %v335_v55 = vrot.slane %v300_v20, 6  ;;  %v336_v59 = vrot.slane %v302_v26, 6  ;;  %v333_v60 = vadd.f32 %v325_v49, %v321_v47 }
  0x42   :  { %v337_v61 = vrot.slane %v304_v28, 6  ;;  %v342_v62 = vadd.f32 %v334_v52, %v330_v50  ;;  %v354_v0 = vrot.slane %v674_v19, 2  ;;  %v293_v1 = vcombine.low %v285_v46, %v292_v53 }
  0x43   :  { %v343_v2 = vadd.f32 %v335_v55, %v331_v51  ;;  %v344_v3 = vadd.f32 %v336_v59, %v332_v54  ;;  %v355_v18 = vrot.slane %v680_v24, 2  ;;  %v356_v17 = vrot.slane %v686_v27, 2 }
  0x44   :  { %v345_v21 = vadd.f32 %v337_v61, %v333_v60  ;;  %v346_v22 = vadd.f32 %v342_v62, %v674_v19  ;;  %v357_v23 = vrot.slane %v692_v32, 2  ;;  %421 = vadd.xlane.f32.xlu0 %v293_v1  ;;  %v366_v26 = vrot.slane %v674_v19, 4 }
  0x45   :  { %v347_v20 = vadd.f32 %v343_v2, %v680_v24  ;;  %v348_v25 = vadd.f32 %v344_v3, %v686_v27  ;;  %v367_v28 = vrot.slane %v680_v24, 4  ;;  %v368_v31 = vrot.slane %v686_v27, 4 }
  0x46   :  { %v349_v29 = vadd.f32 %v345_v21, %v692_v32  ;;  %v362_v30 = vadd.f32 %v354_v0, %v346_v22  ;;  %v369_v33 = vrot.slane %v692_v32, 4  ;;  %v378_v36 = vrot.slane %v674_v19, 6 }
  0x47   :  { %v363_v34 = vadd.f32 %v355_v18, %v347_v20  ;;  %v364_v35 = vadd.f32 %v356_v17, %v348_v25  ;;  %v379_v37 = vrot.slane %v680_v24, 6  ;;  %v380_v40 = vrot.slane %v686_v27, 6 }
  0x48   :  { %v365_v38 = vadd.f32 %v357_v23, %v349_v29  ;;  %v374_v39 = vadd.f32 %v366_v26, %v362_v30  ;;  %v381_v41 = vrot.slane %v692_v32, 6  ;;  %v64_v44 = vmul.f32 %v648_v56, %v596_v5 }
  0x49   :  { %v375_v42 = vadd.f32 %v367_v28, %v363_v34  ;;  %v376_v43 = vadd.f32 %v368_v31, %v364_v35  ;;  %v716_v45 = vmul.f32 %v650_v57, %v598_v6  ;;  %v66_v19 = vmul.f32 %v652_v58, %v600_v7 }
  0x4a   :  { %v377_v46 = vadd.f32 %v369_v33, %v365_v38  ;;  %v386_v47 = vadd.f32 %v378_v36, %v374_v39  ;;  %v722_v24 = vmul.f32 %v658_v63, %v602_v8  ;;  %v68_v48 = vmul.f32 %v662_v4, %v604_v9 }
  0x4b   :  { %v387_v27 = vadd.f32 %v379_v37, %v375_v42  ;;  %v388_v32 = vadd.f32 %v380_v40, %v376_v43  ;;  %v69_v5 = vmul.f32 %v664_v12, %v606_v10  ;;  %v70_v6 = vmul.f32 %v666_v13, %v614_v14 }
  0x4c   :  { %v389_v56 = vadd.f32 %v381_v41, %v377_v46  ;;  %v71_v57 = vmul.f32 %v668_v16, %v616_v15  ;;  %v76_v7 = vrot.slane %v64_v44, 2  ;;  %v77_v49 = vrot.slane %v66_v19, 2 }
  0x4d   :  { %v394_v58 = vcombine.low %v386_v47, %v387_v27  ;;  %v78_v8 = vrot.slane %v68_v48, 2  ;;  %v88_v63 = vrot.slane %v64_v44, 4  ;;  %v79_v51 = vrot.slane %v70_v6, 2 }
  0x4e   :  { %v395_v50 = vcombine.low %v388_v32, %v389_v56  ;;  %v84_v52 = vadd.f32 %v76_v7, %v64_v44  ;;  %v89_v53 = vrot.slane %v66_v19, 4  ;;  %v85_v4 = vadd.f32 %v77_v49, %v66_v19 }
  0x4f   :  { %v402_v9 = vrot.slane %v394_v58, %v608_v11  ;;  %v86_v10 = vadd.f32 %v78_v8, %v68_v48  ;;  %v90_v12 = vrot.slane %v68_v48, 4  ;;  %v87_v14 = vadd.f32 %v79_v51, %v70_v6 }
  0x50   :  { %v409_v54 = vrot.slane %v395_v50, %v608_v11  ;;  %v91_v13 = vrot.slane %v70_v6, 4  ;;  %v96_v55 = vadd.f32 %v88_v63, %v84_v52  ;;  %v97_v15 = vadd.f32 %v89_v53, %v85_v4 }
  0x51   :  { %v98_v16 = vadd.f32 %v90_v12, %v86_v10  ;;  %v100_v59 = vrot.slane %v64_v44, 6  ;;  %v101_v60 = vrot.slane %v66_v19, 6  ;;  %v102_v0 = vrot.slane %v68_v48, 6 }
  0x52   :  { %v410_v61 = vcombine.low %v402_v9, %v409_v54  ;;  %v99_v62 = vadd.f32 %v91_v13, %v87_v14  ;;  %v103_v1 = vrot.slane %v70_v6, 6  ;;  %v120_v18 = vrot.slane %v716_v45, 2 }
  0x53   :  { %v108_v2 = vadd.f32 %v100_v59, %v96_v55  ;;  %v109_v3 = vadd.f32 %v101_v60, %v97_v15  ;;  %v121_v21 = vrot.slane %v722_v24, 2  ;;  %v110_v22 = vadd.f32 %v102_v0, %v98_v16 }
  0x54   :  { %424 = vadd.xlane.f32.xlu0 %v410_v61  ;;  %v111_v17 = vadd.f32 %v103_v1, %v99_v62  ;;  %v122_v23 = vrot.slane %v69_v5, 2  ;;  %v123_v20 = vrot.slane %v71_v57, 2  ;;  %v132_v28 = vrot.slane %v716_v45, 4 }
  0x55   :  { %v112_v25 = vadd.f32 %v108_v2, %v716_v45  ;;  %v113_v26 = vadd.f32 %v109_v3, %v722_v24  ;;  %v133_v29 = vrot.slane %v722_v24, 4  ;;  %v114_v30 = vadd.f32 %v110_v22, %v69_v5 }
  0x56   :  { %v115_v31 = vadd.f32 %v111_v17, %v71_v57  ;;  %v134_v33 = vrot.slane %v69_v5, 4  ;;  %v135_v34 = vrot.slane %v71_v57, 4  ;;  %v144_v37 = vrot.slane %v716_v45, 6 }
  0x57   :  { %v128_v35 = vadd.f32 %v120_v18, %v112_v25  ;;  %v129_v36 = vadd.f32 %v121_v21, %v113_v26  ;;  %v145_v38 = vrot.slane %v722_v24, 6  ;;  %v130_v39 = vadd.f32 %v122_v23, %v114_v30 }
  0x58   :  { %v131_v40 = vadd.f32 %v123_v20, %v115_v31  ;;  %v146_v41 = vrot.slane %v69_v5, 6  ;;  %v147_v42 = vrot.slane %v71_v57, 6 }
  0x59   :  { %v140_v43 = vadd.f32 %v132_v28, %v128_v35  ;;  %v141_v44 = vadd.f32 %v133_v29, %v129_v36  ;;  %v142_v46 = vadd.f32 %v134_v33, %v130_v39 }
  0x5a   :  { %v143_v47 = vadd.f32 %v135_v34, %v131_v40 }
  0x5b   :  { %v152_v19 = vadd.f32 %v144_v37, %v140_v43  ;;  %v153_v27 = vadd.f32 %v145_v38, %v141_v44  ;;  %v154_v32 = vadd.f32 %v146_v41, %v142_v46 }
  0x5c   :  { %v155_v48 = vadd.f32 %v147_v42, %v143_v47 }
  0x5d   :  { %v160_v56 = vcombine.low %v152_v19, %v153_v27 }
  0x5e   :  { %v161_v6 = vcombine.low %v154_v32, %v155_v48 }
  0x5f   :  { %v168_v7 = vrot.slane %v160_v56, %v608_v11 }
  0x60   :  { %v175_v45 = vrot.slane %v161_v6, %v608_v11 }
  0x62   :  { %v176_v58 = vcombine.low %v168_v7, %v175_v45 }
  0x64   :  { %418 = vadd.xlane.f32.xlu1 %v176_v58 }
  0xd1   :  { %v422_v24 = vpop.xlane.xlu0 %421 }
  0xd2   :  { %471 = vrsqrt.f32 %v422_v24  ;;  %vm428_vm0 = vcmp.eq.f32.partialorder %v422_v24, inf  ;;  %v431_v51 = vand.u32 2147483648, %v422_v24  ;;  %vm430_vm2 = vcmp.eq.f32.partialorder %v422_v24, 0.0 }
  0xdc   :  { %v472_v57 = vpop.eup %471 }
  0xdd   :  { %v427_v49 = vmul.f32 %v472_v57, %v422_v24 }
  0xdf   :  { %v429_v63 = vsel %vm428_vm0, %v422_v24, %v427_v49 }
  0xe0   :  { %v432_v9 = vsel %vm430_vm2, %v431_v51, %v429_v63 }
  0xe1   :  { %v425_v5 = vpop.xlane.xlu0 %424 }
  0xe2   :  { %473 = vrsqrt.f32 %v425_v5  ;;  %vm435_vm1 = vcmp.eq.f32.partialorder %v425_v5, inf  ;;  %v438_v52 = vand.u32 2147483648, %v425_v5  ;;  %vm437_vm3 = vcmp.eq.f32.partialorder %v425_v5, 0.0 }
  0xec   :  { %v474_v8 = vpop.eup %473 }
  0xed   :  { %v434_v50 = vmul.f32 %v474_v8, %v425_v5 }
  0xef   :  { %v436_v53 = vsel %vm435_vm1, %v425_v5, %v434_v50 }
  0xf0   :  { %v439_v11 = vsel %vm437_vm3, %v438_v52, %v436_v53 }
  0xf1   :  { %v440_v4 = vmul.f32 %v439_v11, %v432_v9  ;;  %v419_v12 = vpop.xlane.xlu1 %418 }
  0xf3   :  { %v441_v10 = vmax.f32 %v440_v4, 1e-08 }
  0xf5   :  { %475 = vrcp.f32 %v441_v10 }
  0xff   :  { %v476_v54 = vpop.eup %475 }
 0x100   :  { %v443_v14 = vmul.f32 %v476_v54, %v419_v12 }
 0x102   :  { %444 = vst [vmem:[#allocation10] sm:$0xff] %v443_v14 }
 0x103   :  { %449 = vsyncadd [#allocation7], 96  ;;  %s554_s1 = smov [#allocation10]  }
 0x104   :  { %s450_s8 = sshll.u32 %s554_s1, 4  ;;  %s451_s8 = int_to_ptr.vmem [resolvable:$true] %s450_s8 }
 0x105   :  { %s521_s9 = scalar_lea.vmem %s451_s8, 32  ;;  %s525_s10 = scalar_lea.vmem %s451_s8, 128 }
 0x106   :  { %p522_p2 = scmp.ne.s32.totalorder %s451_s8, %s521_s9  ;;  %p526_p3 = scmp.lt.s32.totalorder %s451_s8, %s451_s8 }
 0x107   :  { %p527_p4 = scmp.lt.s32.totalorder %s525_s10, %s521_s9 }
 0x109   :  { %p528_p5 = por %p527_p4, %p526_p3 }
 0x10b   :  { %p529_p6 = pnand %p528_p5, %p522_p2 }
 0x10d   :  { %532 = shalt.err (!%p529_p6)
}
 0x10e   :  { %s533_s13 = scalar_lea.hbm %s758_s2, 32 }
 0x10f   :  { %p534_p7 = scmp.ne.s32.totalorder %s758_s2, %s533_s13  ;;  %p537_p8 = scmp.lt.u32.totalorder %s533_s13, %s758_s2 }
 0x111   :  { %p539_p9 = pnand %p537_p8, %p534_p7 }
 0x113   :  { %542 = shalt.err (!%p539_p9)
}
 0x114   :  { %s555_s18 = smov 32   ;;  %s556_s19 = smov 2  }
 0x115   :  { %456 = dma.vmem_to_hbm [thread:$0]  %s451_s8, 32, %s758_s2, [#allocation7], %s555_s18, %s555_s18, %s556_s19  }
 0x116   :  { %547 = dma.done.wait [#allocation7], 128  }
 0x117   :  { %548 = vsyncadd [#allocation7], 4294967168 }
 0x118   :  { %460 = vsyncpa [#allocation6], 1 }
 0x119   :  { %461 = vsyncpa [#allocation9], 1 }
 0x11a   :  { %462 = vsyncpa [#allocation7], 1 }

</bundles_post_ra>
